<compile_context>
chip_gen: v5e
topology: v5e:2x2
jax: 0.10.0
libtpu: 0.0.40
codegen_flags: <defaults>
</compile_context>

<pallas_src>
import functools
import math

import jax
import jax.numpy as jnp
from jax.experimental import pallas as pl
from jax.experimental.pallas import tpu as pltpu


# Safe scoped-VMEM cap on all listed gens: <= 64 MiB physical on v7x, above the
# 16/32 MiB scoped defaults on v5e/v6e so the larger tiles double-buffer cleanly.
_VMEM_LIMIT = 48 * 1024 * 1024


# ----------------------------- helpers -----------------------------

def _round_up(x, m):
    return ((x + m - 1) // m) * m


def _row_tile(m, target):
    """Row tile: multiple of 16 (bf16 (16,128) sublane packing), <= target and
    never larger than round-down(m, 16) when m >= 16, so blocks never exceed
    the array.  Grids use pl.cdiv: no full-tensor pad copy, and the trailing
    partial block is handled with masked stores (bounded padding waste)."""
    return max(16, (min(m, target) // 16) * 16)


def _pad_rows(a, tm):
    """Pad the leading axis up to one tile only for tiny inputs (m < tile)."""
    m = a.shape[0]
    if m < tm:
        a = jnp.pad(a, ((0, tm - m),) + ((0, 0),) * (a.ndim - 1))
    return a


# ----------------------------- Pallas kernels -----------------------------

def _conv1_relu_kernel(p_ref, w_ref, b_ref, o_ref):
    # p: (tm, 9) bf16, w: (9, 4*odim) bf16 (VMEM-resident), b: (1, 4*odim) f32.
    # The (tm, 9) LHS is lane-sparse (padded to 128 lanes in VMEM), but its
    # HBM-side DMA is one contiguous run of tm*18 bytes and its traffic is <2%
    # of the lane-dense (tm, 4*odim) output store, which is the binding HBM
    # cost; tm is sized against the padded (tm, 128) VMEM footprint.
    # TODO(synk): an im2col-free 9-tap shifted-MAC formulation would drop the
    # lane-sparse LHS entirely; left out to keep the single-matmul structure.
    y = jnp.dot(p_ref[...], w_ref[...], preferred_element_type=jnp.float32)
    o_ref[...] = jnp.maximum(y + b_ref[...], 0.0).astype(o_ref.dtype)


def _conv2_fuse_kernel(p_ref, w_ref, b_ref, fw_ref, o_ref, *,
                       n_stacks, n_taps, odim):
    # p:  (tm, 9*4*odim) bf16, natural im2col order (tap, stack, cin) -> each
    #     output row is one fully contiguous HBM run, read exactly once.
    # w:  (4, 9*odim, odim) bf16, constant index_map -> fetched once, resident.
    # b:  (4, 1, odim) f32;  fw: (4,) f32 in SMEM.
    # All four conv2 stacks + ReLU + learned weighted fusion happen in-kernel;
    # only the (tm, odim) bf16 fused tile is written back to HBM.
    fused = None
    for e in range(n_stacks):
        acc = None
        for t in range(n_taps):
            col = (t * n_stacks + e) * odim
            part = jnp.dot(p_ref[:, col:col + odim],
                           w_ref[e, t * odim:(t + 1) * odim, :],
                           preferred_element_type=jnp.float32)
            acc = part if acc is None else acc + part
        y = jnp.maximum(acc + b_ref[e], 0.0) * fw_ref[e]
        fused = y if fused is None else fused + y
    o_ref[...] = fused.astype(o_ref.dtype)


def _linear_pe_kernel(x_ref, w_ref, b_ref, pe_ref, o_ref):
    # x: (1, tt, K3) bf16, w: (K3, odim) bf16 (sqrt(odim) pre-folded),
    # b: (1, odim) f32 (pre-folded), pe: (tt, odim) f32, o: (1, tt, odim) f32.
    y = jnp.dot(x_ref[0], w_ref[...], preferred_element_type=jnp.float32)
    o_ref[0] = y + b_ref[...] + pe_ref[...]


# ----------------------------- pallas_call wrappers -----------------------------

def conv1_fused(p1_flat, w1cat, b1cat, *, tm_target=4096):
    """relu(p1 @ w1cat + b1cat), row-tiled; bf16 in/out, f32 MXU accumulation."""
    M, K = p1_flat.shape
    N = w1cat.shape[1]
    tm = _row_tile(M, tm_target)
    p = _pad_rows(p1_flat.astype(jnp.bfloat16), tm)
    Mg = p.shape[0]
    w = w1cat.astype(jnp.bfloat16)
    b = b1cat.reshape(1, N).astype(jnp.float32)
    out = pl.pallas_call(
        _conv1_relu_kernel,
        out_shape=jax.ShapeDtypeStruct((Mg, N), jnp.bfloat16),
        grid_spec=pltpu.PrefetchScalarGridSpec(
            num_scalar_prefetch=0,
            grid=(pl.cdiv(Mg, tm),),
            in_specs=[pl.BlockSpec((tm, K), lambda i: (i, 0)),
                      pl.BlockSpec((K, N), lambda i: (0, 0)),
                      pl.BlockSpec((1, N), lambda i: (0, 0))],
            out_specs=pl.BlockSpec((tm, N), lambda i: (i, 0)),
        ),
        compiler_params=pltpu.CompilerParams(
            dimension_semantics=("parallel",),
            vmem_limit_bytes=_VMEM_LIMIT),
        cost_estimate=pl.CostEstimate(
            flops=2 * Mg * K * N,
            transcendentals=0,
            bytes_accessed=Mg * K * 2 + K * N * 2 + N * 4 + Mg * N * 2),
    )(p, w, b)
    return out[:M]


def conv2_fused(p2_flat, w2s, b2s, fusion_weights, *, odim, tm_target=512):
    """sum_e fw[e] * relu(conv2_e) fully fused in one kernel.

    p2_flat: (M2, 9*4*odim) natural im2col order; w2s: (4, 9*odim, odim);
    b2s: (4, odim); fusion_weights: (4,).  Output is bf16 (feeds stage 3).
    """
    M, Ktot = p2_flat.shape
    E, K2, N = w2s.shape
    n_taps = K2 // odim
    assert Ktot == n_taps * E * odim
    tm = _row_tile(M, tm_target)      # (tm, 36*odim) bf16 ~9 MiB/buffer at odim=256
    p = _pad_rows(p2_flat.astype(jnp.bfloat16), tm)
    Mg = p.shape[0]
    w = w2s.astype(jnp.bfloat16)
    b = b2s.reshape(E, 1, N).astype(jnp.float32)
    fw = fusion_weights.astype(jnp.float32)
    kernel = functools.partial(_conv2_fuse_kernel,
                               n_stacks=E, n_taps=n_taps, odim=odim)
    out = pl.pallas_call(
        kernel,
        out_shape=jax.ShapeDtypeStruct((Mg, N), jnp.bfloat16),
        grid_spec=pltpu.PrefetchScalarGridSpec(
            num_scalar_prefetch=0,
            grid=(pl.cdiv(Mg, tm),),
            in_specs=[
                pl.BlockSpec((tm, Ktot), lambda i: (i, 0)),
                pl.BlockSpec((E, K2, N), lambda i: (0, 0, 0)),    # resident
                pl.BlockSpec((E, 1, N), lambda i: (0, 0, 0)),     # resident
                pl.BlockSpec(memory_space=pltpu.MemorySpace.SMEM),
            ],
            out_specs=pl.BlockSpec((tm, N), lambda i: (i, 0)),
        ),
        compiler_params=pltpu.CompilerParams(
            dimension_semantics=("parallel",),
            vmem_limit_bytes=_VMEM_LIMIT),
        cost_estimate=pl.CostEstimate(
            flops=2 * Mg * E * K2 * N,
            transcendentals=0,
            bytes_accessed=(Mg * Ktot * 2 + E * K2 * N * 2
                            + E * N * 4 + E * 4 + Mg * N * 2)),
    )(p, w, b, fw)
    return out[:M]


def linear_scale_pe(x_btk, w_kn, b_n, pe_tn, *, tt_target=512):
    """(x @ w + b) + pe, tiled over (batch, time); sqrt(odim) folded into w/b."""
    B, T, K = x_btk.shape
    N = w_kn.shape[1]
    tt = _row_tile(T, tt_target)
    x = x_btk.astype(jnp.bfloat16)
    pe = pe_tn.astype(jnp.float32)
    if T < tt:                                   # only for very short sequences
        x = jnp.pad(x, ((0, 0), (0, tt - T), (0, 0)))
        pe = jnp.pad(pe, ((0, tt - T), (0, 0)))
    Tg = x.shape[1]
    w = w_kn.astype(jnp.bfloat16)
    b = b_n.reshape(1, N).astype(jnp.float32)
    out = pl.pallas_call(
        _linear_pe_kernel,
        out_shape=jax.ShapeDtypeStruct((B, Tg, N), jnp.float32),
        grid_spec=pltpu.PrefetchScalarGridSpec(
            num_scalar_prefetch=0,
            grid=(B, pl.cdiv(Tg, tt)),
            in_specs=[
                pl.BlockSpec((1, tt, K), lambda bb, ti: (bb, ti, 0)),
                pl.BlockSpec((K, N), lambda bb, ti: (0, 0)),
                pl.BlockSpec((1, N), lambda bb, ti: (0, 0)),
                pl.BlockSpec((tt, N), lambda bb, ti: (ti, 0)),
            ],
            out_specs=pl.BlockSpec((1, tt, N), lambda bb, ti: (bb, ti, 0)),
        ),
        compiler_params=pltpu.CompilerParams(
            dimension_semantics=("parallel", "parallel"),
            vmem_limit_bytes=_VMEM_LIMIT),
        cost_estimate=pl.CostEstimate(
            flops=2 * B * Tg * K * N,
            transcendentals=0,
            bytes_accessed=(B * Tg * K * 2 + K * N * 2 + N * 4
                            + Tg * N * 4 + B * Tg * N * 4)),
    )(x, w, b, pe)
    return out[:, :T, :]


# ----------------------------- glue (plain JAX) -----------------------------

def _im2col_nhwc(x, k=3, s=2):
    """x: (B, H, W, C) channels-last -> (B, Ho, Wo, k*k*C); last dim = (tap, C)."""
    B, H, W, C = x.shape
    Ho = (H - k) // s + 1
    Wo = (W - k) // s + 1
    cols = []
    for dh in range(k):
        for dw in range(k):
            cols.append(x[:, dh:dh + s * Ho:s, dw:dw + s * Wo:s, :])
    return jnp.concatenate(cols, axis=-1)


def positional_encoding(length, d_model):
    pos = jnp.arange(length, dtype=jnp.float32)[:, None]
    div = jnp.exp(jnp.arange(0, d_model, 2, dtype=jnp.float32)
                  * (-math.log(10000.0) / d_model))
    pe = jnp.zeros((length, d_model), jnp.float32)
    pe = pe.at[:, 0::2].set(jnp.sin(pos * div))
    pe = pe.at[:, 1::2].set(jnp.cos(pos * div)[:, : d_model // 2])  # odd-d safe
    return pe


def init_params(idim, odim, key):
    keys = jax.random.split(key, 18)
    convs = []
    ki = 0
    for _ in range(4):
        w1 = 0.10 * jax.random.normal(keys[ki], (odim, 1, 3, 3), jnp.float32); ki += 1
        b1 = 0.10 * jax.random.normal(keys[ki], (odim,), jnp.float32); ki += 1
        w2 = 0.05 * jax.random.normal(keys[ki], (odim, odim, 3, 3), jnp.float32); ki += 1
        b2 = 0.10 * jax.random.normal(keys[ki], (odim,), jnp.float32); ki += 1
        convs.append((w1, b1, w2, b2))
    f2 = ((idim - 1) // 2 - 1) // 2
    w_out = 0.05 * jax.random.normal(keys[16], (odim, odim * f2), jnp.float32)
    b_out = 0.10 * jax.random.normal(keys[17], (odim,), jnp.float32)
    return {
        "convs": convs,
        "w_out": w_out,
        "b_out": b_out,
        "fusion_weights": jnp.ones((4,), jnp.float32),  # nn.Parameter(torch.ones(4))
    }


def conv2d_subsampling_fused(x, x_mask, params, odim):
    """Forward of Conv2dSubsamplingFUSED.  x: (B, T, idim), x_mask: (B, 1, T)."""
    B, T, idim = x.shape
    xin = x.astype(jnp.bfloat16)[..., None]             # (B, T, idim, 1) NHWC

    # ---- stage 1: shared patches, 4 conv1 stacks concatenated along N ----
    p1 = _im2col_nhwc(xin)                              # (B, T1, F1, 9)
    _, T1, F1, K1 = p1.shape
    w1cat = jnp.concatenate(
        [jnp.transpose(w1, (2, 3, 1, 0)).reshape(K1, odim)
         for (w1, _, _, _) in params["convs"]], axis=1)               # (9, 4*odim)
    b1cat = jnp.concatenate([b1 for (_, b1, _, _) in params["convs"]])
    h1 = conv1_fused(p1.reshape(B * T1 * F1, K1), w1cat, b1cat)       # (M1, 4*odim) bf16
    h1 = h1.reshape(B, T1, F1, 4 * odim)                # channels-last, no relayout

    # ---- stage 2: im2col stays in natural (tap, stack, cin) order -> pure
    # reshape; no (4, M2, K2) transpose/copy in HBM.
    # TODO(synk): fuse this im2col into the conv2 kernel (overlapping row bands
    # of h1 via manual DMA) to remove the remaining ~2.25x h1 patch round trip.
    p2 = _im2col_nhwc(h1)                               # (B, T2, F2, 9*4*odim)
    _, T2, F2, Ktot = p2.shape
    p2 = p2.reshape(B * T2 * F2, Ktot)

    w2s = jnp.stack([jnp.transpose(w2, (2, 3, 1, 0)).reshape(9 * odim, odim)
                     for (_, _, w2, _) in params["convs"]], axis=0)   # (4, 9*odim, odim)
    b2s = jnp.stack([b2 for (_, _, _, b2) in params["convs"]], axis=0)

    # conv2 + ReLU + learned weighted fusion, all inside one kernel; bf16 out.
    fused = conv2_fused(p2, w2s, b2s, params["fusion_weights"], odim=odim)

    # ---- stage 3: Linear + PositionalEncoding.  PyTorch flattens features
    # channel-major (odim, F2); we keep the activation in natural (F2, odim)
    # order and permute the Linear WEIGHT rows instead -> no HBM transpose.
    fused = fused.reshape(B, T2, F2 * odim)             # pure reshape
    scale = math.sqrt(odim)
    w_perm = params["w_out"].reshape(odim, odim, F2)
    w_perm = jnp.transpose(w_perm, (0, 2, 1)).reshape(odim, F2 * odim)
    w_lin = (w_perm * scale).T                          # (F2*odim, odim)
    b_lin = params["b_out"] * scale
    pe = positional_encoding(T2, odim)                  # shared across batch
    out = linear_scale_pe(fused, w_lin, b_lin, pe)      # (B, T2, odim) f32
    # TODO(synk): dropout inside PositionalEncoding is identity in eval; omitted.

    if x_mask is None:
        return out, None
    return out, x_mask[:, :, :-2:2][:, :, :-2:2]


# ----------------------------- demo -----------------------------

if __name__ == "__main__":
    B, T, idim, odim = 2, 16, 16, 128

    key = jax.random.PRNGKey(0)
    k_x, k_p = jax.random.split(key)
    x = jax.random.normal(k_x, (B, T, idim), jnp.float32)
    x_mask = jnp.ones((B, 1, T), dtype=jnp.bool_)

    params = init_params(idim, odim, k_p)

    out, out_mask = conv2d_subsampling_fused(x, x_mask, params, odim)
    jax.block_until_ready(out)
    jax.block_until_ready(out_mask)

    t1 = (T - 3) // 2 + 1
    t2 = (t1 - 3) // 2 + 1
    assert out.shape == (B, t2, odim), out.shape
    assert out_mask.shape == (B, 1, t2), out_mask.shape
    assert bool(jnp.all(jnp.isfinite(out)))
    print("KERNEL_OK")
</pallas_src>

<mosaic_0001>
module attributes {stable_mosaic.version = 11 : i64} {
  func.func @_conv1_relu_kernel(%arg0: i32, %arg1: memref<96x9xbf16, #tpu.memory_space<vmem>>, %arg2: memref<9x512xbf16, #tpu.memory_space<vmem>>, %arg3: memref<1x512xf32, #tpu.memory_space<vmem>>, %arg4: memref<96x512xbf16, #tpu.memory_space<vmem>>) attributes {dimension_semantics = [#tpu.dimension_semantics<parallel>], iteration_bounds = array<i64: 2>, scalar_prefetch = 0 : i64, scratch_operands = 0 : i64, tpu.core_type = #tpu.core_type<tc>, window_params = [{transform_indices = @transform_0, window_bounds = array<i64: 96, 9>}, {pipeline_mode = #tpu.pipeline_mode<synchronous>, transform_indices = @transform_1, window_bounds = array<i64: 9, 512>}, {pipeline_mode = #tpu.pipeline_mode<synchronous>, transform_indices = @transform_2, window_bounds = array<i64: 1, 512>}, {transform_indices = @transform_3, window_bounds = array<i64: 96, 512>}]} {
    %c0 = arith.constant 0 : index
    %c0_0 = arith.constant 0 : index
    %0 = vector.load %arg1[%c0, %c0_0] : memref<96x9xbf16, #tpu.memory_space<vmem>>, vector<96x9xbf16>
    %c0_1 = arith.constant 0 : index
    %c0_2 = arith.constant 0 : index
    %1 = vector.load %arg2[%c0_1, %c0_2] : memref<9x512xbf16, #tpu.memory_space<vmem>>, vector<9x512xbf16>
    %cst = arith.constant dense<0.000000e+00> : vector<96x512xf32>
    %2 = tpu.matmul %0, %1, %cst {dimension_numbers = #tpu.dot_dimension_numbers<[1], [0], [0], [1], [0, 0, 1, 1], [], []>} : vector<96x9xbf16>, vector<9x512xbf16>, vector<96x512xf32> -> vector<96x512xf32>
    %c0_3 = arith.constant 0 : index
    %c0_4 = arith.constant 0 : index
    %3 = vector.load %arg3[%c0_3, %c0_4] : memref<1x512xf32, #tpu.memory_space<vmem>>, vector<1x512xf32>
    %4 = vector.broadcast %3 : vector<1x512xf32> to vector<96x512xf32>
    %5 = arith.addf %2, %4 : vector<96x512xf32>
    %cst_5 = arith.constant 0.000000e+00 : f32
    %6 = vector.broadcast %cst_5 : f32 to vector<96x512xf32>
    %7 = arith.maximumf %5, %6 : vector<96x512xf32>
    %8 = arith.truncf %7 : vector<96x512xf32> to vector<96x512xbf16>
    %c0_6 = arith.constant 0 : index
    %c0_7 = arith.constant 0 : index
    %9 = vector.load %arg4[%c0_6, %c0_7] : memref<96x512xbf16, #tpu.memory_space<vmem>>, vector<96x512xbf16>
    tpu.vector_store %arg4[%c0_6, %c0_7], %8 {strides = array<i32>} : memref<96x512xbf16, #tpu.memory_space<vmem>>, vector<96x512xbf16>,
    return
  }
  func.func @transform_0(%arg0: i32) -> (i32, i32) {
    %c0_i32 = arith.constant 0 : i32
    %c0_i32_0 = arith.constant 0 : i32
    return %arg0, %c0_i32 : i32, i32
  }
  func.func @transform_1(%arg0: i32) -> (i32, i32) {
    %c0_i32 = arith.constant 0 : i32
    %c0_i32_0 = arith.constant 0 : i32
    %c0_i32_1 = arith.constant 0 : i32
    return %c0_i32, %c0_i32_0 : i32, i32
  }
  func.func @transform_2(%arg0: i32) -> (i32, i32) {
    %c0_i32 = arith.constant 0 : i32
    %c0_i32_0 = arith.constant 0 : i32
    %c0_i32_1 = arith.constant 0 : i32
    return %c0_i32, %c0_i32_0 : i32, i32
  }
  func.func @transform_3(%arg0: i32) -> (i32, i32) {
    %c0_i32 = arith.constant 0 : i32
    %c0_i32_0 = arith.constant 0 : i32
    return %arg0, %c0_i32 : i32, i32
  }
}

</mosaic_0001>

<bundles_post_ra>
// kernel: tpu_custom_call.1
= control target key start
LH: loop header
LB: loop body
LE: loop exit
PB: predicated region body
PF: predicated region fallthrough
CT: control target
= control target key end

     0   :  { %8 = vsyncpa [#allocation3], 0  ;;  %s1132_s0 = inlined_call_operand.vmem [shape: bf16[98,9], index: 0, kind: input, shape index: {}]   ;;  %s1133_s1 = inlined_call_operand.vmem [shape: bf16[9,512], index: 1, kind: input, shape index: {}]   ;;  %s1134_s2 = inlined_call_operand.vmem [shape: f32[1,512], index: 2, kind: input, shape index: {}]   ;;  %s1135_s3 = inlined_call_operand.hbm [shape: bf16[98,512], index: 3, kind: output, shape index: {}]  }
   0x1   :  { %10 = vsyncpa [#allocation3 + $0x1], 0  ;;  %s877_s12 = smov 0   ;;  %s879_s13 = smov 0  }
   0x2   :  { %s881_s14 = smov 0   ;;  %s883_s15 = smov 0  }
   0x3 LB: > { %s898_s16 = sadd.s32 4294967295, %s851_s15   ;;  %s644_s17 = sadd.s32 4294967294, %s851_s15   ;;  %s851_s15 = sphi %s883_s15, %s1142_s15   ;;  %s847_s14 = sphi %s881_s14, %s1141_s14   ;;  %s843_s13 = sphi %s879_s13, %s1140_s13   ;;  %s839_s12 = sphi %s877_s12, %s1139_s12  }
   0x4   : > { %s902_s18 = sadd.s32 1, %s851_s15   ;;  %s91_s19 = sadd.s32 1, %s847_s14 }
   0x5   : > { %s88_s20 = ssub.s32 %s851_s15, %s902_s18  ;;  %p101_p0 = scmp.ne.s32.totalorder %s847_s14, %s843_s13 }
   0x6   : > { %p89_p1 = scmp.eq.s32.totalorder %s88_s20, 0  ;;  %p102_p2 = scmp.eq.s32.totalorder %s898_s16, 1 }
   0x7   : > { %p107_p3 = scmp.ne.s32.totalorder %s843_s13, %s839_s12  ;;  %p108_p4 = scmp.eq.s32.totalorder %s644_s17, 1 }
   0x8   : > { %s913_s21 = scalar_select %p89_p1, %s847_s14, %s91_s19  }
   0x9   : > { %p915_p5 = por %p102_p2, %p101_p0  ;;  %p919_p6 = por %p108_p4, %p107_p3 }
   0xa   : > { %p647_p7 = scmp.ge.s32.totalorder %s851_s15, 1  ;;  %p149_p8 = scmp.lt.s32.totalorder %s851_s15, 3 }
   0xc   : > { %p150_p9 = pnand %p647_p7, %p149_p8 }
   0xd   : > { %s938_s5 = smul.u32 (!%p150_p9), 12, %s898_s16  ;;  %s174_s28 = sand.u32 (!%p150_p9), 1, %s843_s13  }
   0xe   : > { %153 = sbr.rel (%p150_p9) target bundleno = 288 (0x120), region = 32  ;;  %s1071_s7 = scalar_lea.sflag (!%p150_p9), [#allocation3], %s174_s28 }
   0xf   : > { %p182_p10 = scmp.lt.s32.totalorder (!%p150_p9), %s938_s5, 12  ;;  %s736_s4 = smul.u32 (!%p150_p9), 192, %s174_s28 }
  0x11   : > { %s997_s6 = scalar_lea.vmem (!%p150_p9), [#allocation2], %s736_s4 }
  0x13   : > { %v675_v0 = vld [vmem:[%s1133_s1] sm:$0xf]  ;;  %v730_v1 = vld [vmem:[%s1133_s1 + $0xc] sm:$0x10]  ;;  %vm289_vm0 = vcmask 1043456   ;;  %vm290_vm1 = vcmask 1044480  }
  0x14   : > { %v676_v2 = vor.u32 %v730_v1, %v675_v0  ;;  %v728_v3 = vld [vmem:[%s1133_s1 + $0x4] sm:$0xf]  ;;  %v677_v4 = vld [vmem:[%s1133_s1 + $0x10] sm:$0x10]  ;;  %v853_v5 = vmov 65535   ;;  %s183_s20 = scalar_select %p182_p10, %s938_s5, 12 }
  0x15   : > { %v291_v6 = vsel %vm289_vm0, 4294967295, %v853_v5  ;;  %v680_v7 = vor.u32 %v728_v3, %v677_v4  ;;  %v683_v8 = vld [vmem:[%s1133_s1 + $0x8] sm:$0xf]  ;;  %v731_v9 = vld [vmem:[%s1133_s1 + $0x14] sm:$0x10]  ;;  %vm270_vm2 = vcmask 72704  }
  0x16   : > { %v292_v10 = vsel %vm290_vm1, %v291_v6, 0  ;;  %v684_v11 = vor.u32 %v731_v9, %v683_v8  ;;  %v729_v12 = vld [vmem:[%s1133_s1 + $0xc] sm:$0xf]  ;;  %v685_v13 = vld [vmem:[%s1133_s1 + $0x18] sm:$0x10]  ;;  %s648_s24 = sshll.u32 %s183_s20, 2 }
  0x17   : > { %v294_v14 = vand.u32 %v676_v2, %v292_v10  ;;  %v297_v15 = vand.u32 %v680_v7, %v292_v10  ;;  %v688_v16 = vor.u32 %v729_v12, %v685_v13  ;;  %s185_s27 = scalar_lea.vmem %s1132_s0, %s648_s24  ;;  %v214_v25 = vld [vmem:[%s1134_s2] sm:$0xf]  ;;  %s566_s8 = ssub.s32 (%p915_p5), 13, %s938_s5 }
  0x18   : > { %v300_v17 = vand.u32 %v684_v11, %v292_v10  ;;  %v722_v19 = vld [vmem:[%s185_s27] sm:$0xff]  ;;  %v723_v20 = vld [vmem:[%s185_s27 + $0x8] sm:$0xff]  ;;  %v724_v21 = vld [vmem:[%s185_s27 + $0x10] sm:$0xff]  ;;  %v985_v26 = vperm.slane %v214_v25, 0  ;;  %v987_v27 = vperm.slane %v214_v25, 1  ;;  %v993_v34 = vperm.slane %v214_v25, 2 }
  0x19   : > { %312 = vmatpush.bf16.msra.mxu0 %v294_v14  ;;  %351 = vmatpush.bf16.msra.mxu1 %v297_v15  ;;  %v303_v18 = vand.u32 %v688_v16, %v292_v10  ;;  %v725_v22 = vld [vmem:[%s185_s27 + $0x18] sm:$0xff]  ;;  %v726_v23 = vld [vmem:[%s185_s27 + $0x20] sm:$0xff]  ;;  %v727_v24 = vld [vmem:[%s185_s27 + $0x28] sm:$0xff]  ;;  %v995_v35 = vperm.slane %v214_v25, 3  ;;  %p567_p11 = scmp.lt.s32.totalorder (%p915_p5), %s566_s8, 12 }
  0x1a   : > { %390 = vmatpush.bf16.msra.mxu2 %v300_v17 }
  0x1b   : > { %429 = vmatpush.bf16.msra.mxu3 %v303_v18 }
  0x1c   : > { %689 = vmatmul.msk.bf16.vlgmr.msra.gmra.mxu0 %vm270_vm2, %v722_v19  ;;  %695 = vmatmul.msk.bf16.vlgmr.msra.gmra.mxu1 %vm270_vm2, %v722_v19 }
  0x1d   : > { %701 = vmatmul.msk.bf16.vlgmr.msra.gmra.mxu2 %vm270_vm2, %v722_v19 }
  0x1e   : > { %707 = vmatmul.msk.bf16.vlgmr.msra.gmra.mxu3 %vm270_vm2, %v722_v19 }
  0x2c   : > { %690 = vmatmul.msk.bf16.gmra.mxu0 %vm270_vm2, %v723_v20  ;;  %696 = vmatmul.msk.bf16.gmra.mxu1 %vm270_vm2, %v723_v20 }
  0x2d   : > { %702 = vmatmul.msk.bf16.gmra.mxu2 %vm270_vm2, %v723_v20 }
  0x2e   : > { %708 = vmatmul.msk.bf16.gmra.mxu3 %vm270_vm2, %v723_v20 }
  0x3c   : > { %691 = vmatmul.msk.bf16.gmra.mxu0 %vm270_vm2, %v724_v21  ;;  %697 = vmatmul.msk.bf16.gmra.mxu1 %vm270_vm2, %v724_v21 }
  0x3d   : > { %703 = vmatmul.msk.bf16.gmra.mxu2 %vm270_vm2, %v724_v21 }
  0x3e   : > { %709 = vmatmul.msk.bf16.gmra.mxu3 %vm270_vm2, %v724_v21 }
  0x4c   : > { %692 = vmatmul.msk.bf16.gmra.mxu0 %vm270_vm2, %v725_v22  ;;  %698 = vmatmul.msk.bf16.gmra.mxu1 %vm270_vm2, %v725_v22 }
  0x4d   : > { %704 = vmatmul.msk.bf16.gmra.mxu2 %vm270_vm2, %v725_v22 }
  0x4e   : > { %710 = vmatmul.msk.bf16.gmra.mxu3 %vm270_vm2, %v725_v22 }
  0x5c   : > { %693 = vmatmul.msk.bf16.gmra.mxu0 %vm270_vm2, %v726_v23  ;;  %699 = vmatmul.msk.bf16.gmra.mxu1 %vm270_vm2, %v726_v23 }
  0x5d   : > { %705 = vmatmul.msk.bf16.gmra.mxu2 %vm270_vm2, %v726_v23 }
  0x5e   : > { %711 = vmatmul.msk.bf16.gmra.mxu3 %vm270_vm2, %v726_v23 }
  0x6c   : > { %694 = vmatmul.msk.bf16.gmra.mxu0 %vm270_vm2, %v727_v24  ;;  %700 = vmatmul.msk.bf16.gmra.mxu1 %vm270_vm2, %v727_v24 }
  0x6d   : > { %706 = vmatmul.msk.bf16.gmra.mxu2 %vm270_vm2, %v727_v24 }
  0x6e   : > { %712 = vmatmul.msk.bf16.gmra.mxu3 %vm270_vm2, %v727_v24 }
  0x99   : > { %v314_v28 = vpop.f32.mrf.mxu0  ;;  %v353_v29 = vpop.f32.mrf.mxu1 }
  0x9a   : > { %v315_v30 = vadd.f32 %v314_v28, %v985_v26  ;;  %v354_v31 = vadd.f32 %v353_v29, %v987_v27 }
  0x9c   : > { %v461_v32 = vmax.f32 %v315_v30, 0.0  ;;  %v462_v33 = vmax.f32 %v354_v31, 0.0 }
  0x9e   : > { %v509_v36 = vpack.c.bf16 %v462_v33, %v461_v32 }
  0xa0   : > { %533 = vst [vmem:[%s997_s6] sm:$0xff] %v509_v36  ;;  %v392_v37 = vpop.f32.mrf.mxu2 }
  0xa1   : > { %v431_v38 = vpop.f32.mrf.mxu3  ;;  %v393_v39 = vadd.f32 %v392_v37, %v993_v34  ;;  %v316_v41 = vpop.f32.mrf.mxu0 }
  0xa2   : > { %v432_v40 = vadd.f32 %v431_v38, %v995_v35  ;;  %v355_v42 = vpop.f32.mrf.mxu1  ;;  %v317_v43 = vadd.f32 %v316_v41, %v985_v26 }
  0xa3   : > { %v356_v44 = vadd.f32 %v355_v42, %v987_v27  ;;  %v463_v45 = vmax.f32 %v393_v39, 0.0 }
  0xa4   : > { %v464_v46 = vmax.f32 %v432_v40, 0.0  ;;  %v465_v47 = vmax.f32 %v317_v43, 0.0 }
  0xa5   : > { %v466_v48 = vmax.f32 %v356_v44, 0.0 }
  0xa6   : > { %v510_v49 = vpack.c.bf16 %v464_v46, %v463_v45 }
  0xa7   : > { %v511_v50 = vpack.c.bf16 %v466_v48, %v465_v47 }
  0xa8   : > { %534 = vst [vmem:[%s997_s6 + $0x8] sm:$0xff] %v510_v49  ;;  %v394_v51 = vpop.f32.mrf.mxu2 }
  0xa9   : > { %535 = vst [vmem:[%s997_s6 + $0x10] sm:$0xff] %v511_v50  ;;  %v433_v52 = vpop.f32.mrf.mxu3  ;;  %v395_v53 = vadd.f32 %v394_v51, %v993_v34  ;;  %v319_v55 = vpop.f32.mrf.mxu0 }
  0xaa   : > { %v434_v54 = vadd.f32 %v433_v52, %v995_v35  ;;  %v358_v56 = vpop.f32.mrf.mxu1  ;;  %v320_v57 = vadd.f32 %v319_v55, %v985_v26 }
  0xab   : > { %v359_v58 = vadd.f32 %v358_v56, %v987_v27  ;;  %v467_v59 = vmax.f32 %v395_v53, 0.0 }
  0xac   : > { %v468_v60 = vmax.f32 %v434_v54, 0.0  ;;  %v469_v61 = vmax.f32 %v320_v57, 0.0 }
  0xad   : > { %v470_v62 = vmax.f32 %v359_v58, 0.0 }
  0xae   : > { %v512_v63 = vpack.c.bf16 %v468_v60, %v467_v59 }
  0xaf   : > { %v513_v0 = vpack.c.bf16 %v470_v62, %v469_v61 }
  0xb0   : > { %536 = vst [vmem:[%s997_s6 + $0x18] sm:$0xff] %v512_v63  ;;  %v397_v1 = vpop.f32.mrf.mxu2 }
  0xb1   : > { %537 = vst [vmem:[%s997_s6 + $0x20] sm:$0xff] %v513_v0  ;;  %v436_v2 = vpop.f32.mrf.mxu3  ;;  %v398_v3 = vadd.f32 %v397_v1, %v993_v34  ;;  %v321_v5 = vpop.f32.mrf.mxu0 }
  0xb2   : > { %v437_v4 = vadd.f32 %v436_v2, %v995_v35  ;;  %v360_v6 = vpop.f32.mrf.mxu1  ;;  %v322_v7 = vadd.f32 %v321_v5, %v985_v26 }
  0xb3   : > { %v361_v8 = vadd.f32 %v360_v6, %v987_v27  ;;  %v471_v9 = vmax.f32 %v398_v3, 0.0 }
  0xb4   : > { %v472_v10 = vmax.f32 %v437_v4, 0.0  ;;  %v473_v11 = vmax.f32 %v322_v7, 0.0 }
  0xb5   : > { %v474_v12 = vmax.f32 %v361_v8, 0.0 }
  0xb6   : > { %v514_v13 = vpack.c.bf16 %v472_v10, %v471_v9 }
  0xb7   : > { %v515_v14 = vpack.c.bf16 %v474_v12, %v473_v11 }
  0xb8   : > { %538 = vst [vmem:[%s997_s6 + $0x28] sm:$0xff] %v514_v13  ;;  %v399_v15 = vpop.f32.mrf.mxu2 }
  0xb9   : > { %539 = vst [vmem:[%s997_s6 + $0x30] sm:$0xff] %v515_v14  ;;  %v438_v16 = vpop.f32.mrf.mxu3  ;;  %v400_v17 = vadd.f32 %v399_v15, %v993_v34  ;;  %v324_v19 = vpop.f32.mrf.mxu0 }
  0xba   : > { %v439_v18 = vadd.f32 %v438_v16, %v995_v35  ;;  %v363_v20 = vpop.f32.mrf.mxu1  ;;  %v325_v21 = vadd.f32 %v324_v19, %v985_v26 }
  0xbb   : > { %v364_v22 = vadd.f32 %v363_v20, %v987_v27  ;;  %v475_v23 = vmax.f32 %v400_v17, 0.0 }
  0xbc   : > { %v476_v24 = vmax.f32 %v439_v18, 0.0  ;;  %v477_v25 = vmax.f32 %v325_v21, 0.0 }
  0xbd   : > { %v478_v28 = vmax.f32 %v364_v22, 0.0 }
  0xbe   : > { %v516_v29 = vpack.c.bf16 %v476_v24, %v475_v23 }
  0xbf   : > { %v517_v30 = vpack.c.bf16 %v478_v28, %v477_v25 }
  0xc0   : > { %540 = vst [vmem:[%s997_s6 + $0x38] sm:$0xff] %v516_v29  ;;  %v402_v31 = vpop.f32.mrf.mxu2 }
  0xc1   : > { %541 = vst [vmem:[%s997_s6 + $0x40] sm:$0xff] %v517_v30  ;;  %v441_v32 = vpop.f32.mrf.mxu3  ;;  %v403_v33 = vadd.f32 %v402_v31, %v993_v34  ;;  %v326_v37 = vpop.f32.mrf.mxu0 }
  0xc2   : > { %v442_v36 = vadd.f32 %v441_v32, %v995_v35  ;;  %v365_v38 = vpop.f32.mrf.mxu1  ;;  %v327_v39 = vadd.f32 %v326_v37, %v985_v26 }
  0xc3   : > { %v366_v40 = vadd.f32 %v365_v38, %v987_v27  ;;  %v479_v41 = vmax.f32 %v403_v33, 0.0 }
  0xc4   : > { %v480_v42 = vmax.f32 %v442_v36, 0.0  ;;  %v481_v43 = vmax.f32 %v327_v39, 0.0 }
  0xc5   : > { %v482_v44 = vmax.f32 %v366_v40, 0.0 }
  0xc6   : > { %v518_v45 = vpack.c.bf16 %v480_v42, %v479_v41 }
  0xc7   : > { %v519_v46 = vpack.c.bf16 %v482_v44, %v481_v43 }
  0xc8   : > { %542 = vst [vmem:[%s997_s6 + $0x48] sm:$0xff] %v518_v45  ;;  %v404_v47 = vpop.f32.mrf.mxu2 }
  0xc9   : > { %543 = vst [vmem:[%s997_s6 + $0x50] sm:$0xff] %v519_v46  ;;  %v443_v48 = vpop.f32.mrf.mxu3  ;;  %v405_v49 = vadd.f32 %v404_v47, %v993_v34  ;;  %v329_v51 = vpop.f32.mrf.mxu0 }
  0xca   : > { %v444_v50 = vadd.f32 %v443_v48, %v995_v35  ;;  %v368_v52 = vpop.f32.mrf.mxu1  ;;  %v330_v53 = vadd.f32 %v329_v51, %v985_v26 }
  0xcb   : > { %v369_v54 = vadd.f32 %v368_v52, %v987_v27  ;;  %v483_v55 = vmax.f32 %v405_v49, 0.0 }
  0xcc   : > { %v484_v56 = vmax.f32 %v444_v50, 0.0  ;;  %v485_v57 = vmax.f32 %v330_v53, 0.0 }
  0xcd   : > { %v486_v58 = vmax.f32 %v369_v54, 0.0 }
  0xce   : > { %v520_v59 = vpack.c.bf16 %v484_v56, %v483_v55 }
  0xcf   : > { %v521_v60 = vpack.c.bf16 %v486_v58, %v485_v57 }
  0xd0   : > { %544 = vst [vmem:[%s997_s6 + $0x58] sm:$0xff] %v520_v59  ;;  %v407_v61 = vpop.f32.mrf.mxu2 }
  0xd1   : > { %545 = vst [vmem:[%s997_s6 + $0x60] sm:$0xff] %v521_v60  ;;  %v446_v62 = vpop.f32.mrf.mxu3  ;;  %v408_v63 = vadd.f32 %v407_v61, %v993_v34  ;;  %v331_v1 = vpop.f32.mrf.mxu0 }
  0xd2   : > { %v447_v0 = vadd.f32 %v446_v62, %v995_v35  ;;  %v370_v2 = vpop.f32.mrf.mxu1  ;;  %v332_v3 = vadd.f32 %v331_v1, %v985_v26 }
  0xd3   : > { %v371_v4 = vadd.f32 %v370_v2, %v987_v27  ;;  %v487_v5 = vmax.f32 %v408_v63, 0.0 }
  0xd4   : > { %v488_v6 = vmax.f32 %v447_v0, 0.0  ;;  %v489_v7 = vmax.f32 %v332_v3, 0.0 }
  0xd5   : > { %v490_v8 = vmax.f32 %v371_v4, 0.0 }
  0xd6   : > { %v522_v9 = vpack.c.bf16 %v488_v6, %v487_v5 }
  0xd7   : > { %v523_v10 = vpack.c.bf16 %v490_v8, %v489_v7 }
  0xd8   : > { %546 = vst [vmem:[%s997_s6 + $0x68] sm:$0xff] %v522_v9  ;;  %v409_v11 = vpop.f32.mrf.mxu2 }
  0xd9   : > { %547 = vst [vmem:[%s997_s6 + $0x70] sm:$0xff] %v523_v10  ;;  %v448_v12 = vpop.f32.mrf.mxu3  ;;  %v410_v13 = vadd.f32 %v409_v11, %v993_v34  ;;  %v334_v15 = vpop.f32.mrf.mxu0 }
  0xda   : > { %v449_v14 = vadd.f32 %v448_v12, %v995_v35  ;;  %v373_v16 = vpop.f32.mrf.mxu1  ;;  %v335_v17 = vadd.f32 %v334_v15, %v985_v26 }
  0xdb   : > { %v374_v18 = vadd.f32 %v373_v16, %v987_v27  ;;  %v491_v19 = vmax.f32 %v410_v13, 0.0 }
  0xdc   : > { %v492_v20 = vmax.f32 %v449_v14, 0.0  ;;  %v493_v21 = vmax.f32 %v335_v17, 0.0 }
  0xdd   : > { %v494_v22 = vmax.f32 %v374_v18, 0.0 }
  0xde   : > { %v524_v23 = vpack.c.bf16 %v492_v20, %v491_v19 }
  0xdf   : > { %v525_v24 = vpack.c.bf16 %v494_v22, %v493_v21 }
  0xe0   : > { %548 = vst [vmem:[%s997_s6 + $0x78] sm:$0xff] %v524_v23  ;;  %v412_v25 = vpop.f32.mrf.mxu2 }
  0xe1   : > { %549 = vst [vmem:[%s997_s6 + $0x80] sm:$0xff] %v525_v24  ;;  %v451_v28 = vpop.f32.mrf.mxu3  ;;  %v413_v29 = vadd.f32 %v412_v25, %v993_v34  ;;  %v336_v31 = vpop.f32.mrf.mxu0 }
  0xe2   : > { %v452_v30 = vadd.f32 %v451_v28, %v995_v35  ;;  %v375_v32 = vpop.f32.mrf.mxu1  ;;  %v337_v33 = vadd.f32 %v336_v31, %v985_v26 }
  0xe3   : > { %v376_v36 = vadd.f32 %v375_v32, %v987_v27  ;;  %v495_v37 = vmax.f32 %v413_v29, 0.0 }
  0xe4   : > { %v496_v38 = vmax.f32 %v452_v30, 0.0  ;;  %v497_v39 = vmax.f32 %v337_v33, 0.0 }
  0xe5   : > { %v498_v40 = vmax.f32 %v376_v36, 0.0 }
  0xe6   : > { %v526_v41 = vpack.c.bf16 %v496_v38, %v495_v37 }
  0xe7   : > { %v527_v42 = vpack.c.bf16 %v498_v40, %v497_v39 }
  0xe8   : > { %550 = vst [vmem:[%s997_s6 + $0x88] sm:$0xff] %v526_v41  ;;  %v414_v43 = vpop.f32.mrf.mxu2 }
  0xe9   : > { %551 = vst [vmem:[%s997_s6 + $0x90] sm:$0xff] %v527_v42  ;;  %v453_v44 = vpop.f32.mrf.mxu3  ;;  %v415_v45 = vadd.f32 %v414_v43, %v993_v34  ;;  %v339_v47 = vpop.f32.mrf.mxu0 }
  0xea   : > { %v454_v46 = vadd.f32 %v453_v44, %v995_v35  ;;  %v378_v48 = vpop.f32.mrf.mxu1  ;;  %v340_v49 = vadd.f32 %v339_v47, %v985_v26 }
  0xeb   : > { %v379_v50 = vadd.f32 %v378_v48, %v987_v27  ;;  %v499_v51 = vmax.f32 %v415_v45, 0.0 }
  0xec   : > { %v500_v52 = vmax.f32 %v454_v46, 0.0  ;;  %v501_v53 = vmax.f32 %v340_v49, 0.0 }
  0xed   : > { %v502_v54 = vmax.f32 %v379_v50, 0.0 }
  0xee   : > { %v528_v55 = vpack.c.bf16 %v500_v52, %v499_v51 }
  0xef   : > { %v529_v56 = vpack.c.bf16 %v502_v54, %v501_v53 }
  0xf0   : > { %552 = vst [vmem:[%s997_s6 + $0x98] sm:$0xff] %v528_v55  ;;  %v417_v57 = vpop.f32.mrf.mxu2 }
  0xf1   : > { %553 = vst [vmem:[%s997_s6 + $0xa0] sm:$0xff] %v529_v56  ;;  %v456_v58 = vpop.f32.mrf.mxu3  ;;  %v418_v59 = vadd.f32 %v417_v57, %v993_v34  ;;  %v341_v61 = vpop.f32.mrf.mxu0 }
  0xf2   : > { %v457_v60 = vadd.f32 %v456_v58, %v995_v35  ;;  %v380_v62 = vpop.f32.mrf.mxu1  ;;  %v342_v63 = vadd.f32 %v341_v61, %v985_v26 }
  0xf3   : > { %v381_v0 = vadd.f32 %v380_v62, %v987_v27  ;;  %v503_v1 = vmax.f32 %v418_v59, 0.0 }
  0xf4   : > { %v504_v2 = vmax.f32 %v457_v60, 0.0  ;;  %v505_v3 = vmax.f32 %v342_v63, 0.0 }
  0xf5   : > { %v506_v4 = vmax.f32 %v381_v0, 0.0 }
  0xf6   : > { %v530_v5 = vpack.c.bf16 %v504_v2, %v503_v1 }
  0xf7   : > { %v531_v6 = vpack.c.bf16 %v506_v4, %v505_v3 }
  0xf8   : > { %554 = vst [vmem:[%s997_s6 + $0xa8] sm:$0xff] %v530_v5  ;;  %v419_v7 = vpop.f32.mrf.mxu2 }
  0xf9   : > { %555 = vst [vmem:[%s997_s6 + $0xb0] sm:$0xff] %v531_v6  ;;  %v458_v8 = vpop.f32.mrf.mxu3  ;;  %v420_v9 = vadd.f32 %v419_v7, %v993_v34 }
  0xfa   : > { %v459_v10 = vadd.f32 %v458_v8, %v995_v35 }
  0xfb   : > { %v507_v11 = vmax.f32 %v420_v9, 0.0 }
  0xfc   : > { %v508_v26 = vmax.f32 %v459_v10, 0.0  ;;  %564 = sbr.rel (!%p915_p5) target bundleno = 288 (0x120), region = 36 }
  0xfe   : > { %v532_v12 = vpack.c.bf16 %v508_v26, %v507_v11 }
 0x100   : > { %556 = vst [vmem:[%s997_s6 + $0xb8] sm:$0xff] %v532_v12 }
 0x101   : > { %s1144_s8 = smov (!%p567_p11, %s566_s8), 12 }
 0x102   : > { %s732_s9 = sshll.u32 %s1144_s8, 4 }
 0x103   : > { %s571_s10 = ssub.s32 192, %s732_s9 }
 0x104   : > { %s572_s11 = sshll.u32 %s571_s10, 4 }
 0x105   : > { %573 = vsyncadd %s1071_s7, %s572_s11  ;;  %p1080_p12 = scmp.ne.s32.totalorder %s732_s9, 0  ;;  %s735_s22 = smul.u32 192, %s898_s16 }
 0x106   : > { %s579_s19 = sshll.u32 %s997_s6, 4  ;;  %s719_s5 = sshll.u32 %s1144_s8, 8  ;;  %s1090_s19 = int_to_ptr.vmem [resolvable:$true] %s579_s19 }
 0x107   : > { %s577_s25 = scalar_lea.hbm %s1135_s3, %s735_s22  ;;  %s778_s27 = sshra.s32 %s1090_s19, 4  ;;  %s779_s27 = int_to_ptr.vmem [resolvable:$true] %s778_s27 }
 0x108   : > { %s581_s26 = sshll.u32 %s577_s25, 4  ;;  %s780_s28 = sshrl.u32 %s719_s5, 4  ;;  %s1092_s26 = int_to_ptr.hbm [resolvable:$true] %s581_s26 }
 0x109   : > { %s785_s29 = scalar_lea.vmem %s779_s27, %s780_s28  ;;  %s854_s16 = smov [#allocation2]  }
 0x10a   : > { %p786_p13 = scmp.ne.s32.totalorder %s779_s27, %s785_s29  ;;  %s789_s30 = scalar_lea.vmem %s854_s16, 384 }
 0x10b   : > { %p791_p2 = scmp.lt.s32.totalorder %s789_s30, %s785_s29 }
 0x10c   : > { %p787_p0 = pnand %p786_p13, %p1080_p12 }
 0x10e   : > { %p788_p1 = pneg %p787_p0 }
 0x110   : > { %p793_p3 = pnand %p791_p2, %p788_p1 }
 0x112   : > { %796 = shalt.err (!%p793_p3)
}
 0x113   : > { %s797_s4 = sshra.s32 %s1092_s26, 4  ;;  %s808_s11 = scalar_lea.hbm %s1135_s3, 208  ;;  %s798_s4 = int_to_ptr.hbm [resolvable:$true] %s797_s4 }
 0x114   : > { %s804_s6 = scalar_lea.hbm %s798_s4, %s780_s28  ;;  %p809_p8 = scmp.lt.s32.totalorder %s798_s4, %s1135_s3 }
 0x115   : > { %p805_p4 = scmp.ne.s32.totalorder %s798_s4, %s804_s6  ;;  %p810_p9 = scmp.lt.s32.totalorder %s808_s11, %s804_s6 }
 0x117   : > { %p806_p5 = pnand %p805_p4, %p1080_p12  ;;  %p811_p10 = por %p810_p9, %p809_p8 }
 0x119   : > { %p807_p7 = pneg %p806_p5 }
 0x11b   : > { %p812_p11 = pnand %p811_p10, %p807_p7 }
 0x11d   : > { %815 = shalt.err (!%p812_p11)
}
 0x11e   : > { %s855_s24 = smov 256   ;;  %s856_s25 = smov 16  }
 0x11f   : > { %587 = dma.vmem_to_hbm [thread:$0]  (%p1080_p12), %s1090_s19, %s719_s5, %s1092_s26, %s1071_s7, %s855_s24, %s855_s24, %s856_s25  }
 0x120 PF: > { %p742_p13 = scmp.ge.s32.totalorder %s851_s15, 2  ;;  %s596_s27 = sand.u32 1, %s839_s12  }
 0x121   : > { %s597_s28 = scalar_lea.sflag [#allocation3], %s596_s27 }
 0x122   : > { %p739_p0 = pnand %p742_p13, %p919_p6 }
 0x124   : > { %p740_p1 = pneg %p739_p0 }
 0x126   : > { %834 = dma.done.wait (%p740_p1), %s597_s28, 3072  }
 0x127   : > { %836 = vsyncadd (%p740_p1), %s597_s28, 4294964224  ;;  %p13_p2 = scmp.ge.s32.totalorder %s902_s18, 4   ;;  %s1139_s12 = smov %s843_s13 }
 0x128   : > { %s1140_s13 = smov %s847_s14  ;;  %s1141_s14 = smov %s913_s21 }
 0x129   : > { %s1142_s15 = smov %s902_s18  ;;  %15 = sbr.rel (!%p13_p2) target bundleno = 3 (0x3), region = 67 }
 0x12e   :  { %603 = vsyncpa [#allocation3], 1 }
 0x12f   :  { %605 = vsyncpa [#allocation3 + $0x1], 1 }

</bundles_post_ra>
